<compile_context>
chip_gen: v5e
topology: v5e:2x2
jax: 0.10.0
libtpu: 0.0.40
codegen_flags: <defaults>
</compile_context>

<pallas_src>
import jax
import jax.numpy as jnp
import numpy as np
from jax.experimental import pallas as pl
from jax.experimental.pallas import tpu as pltpu

# ---- "config" values (mirrors Caps_Layer.__init__) --------------------------
GRU_LEN = 16
INPUT_DIM_CAPSULE = GRU_LEN * 2        # D = 32
NUM_CAPSULE = 8                        # J
DIM_CAPSULE = 16                       # K
ROUTINGS = 4
T_EPSILON = 1e-7

BATCH = 2
INPUT_NUM_CAPSULE = 8                  # I (sequence length feeding the capsules)


def _caps_kernel(x_ref, w_ref, mgrp_ref, spool_ref, sbcast_ref, v_ref, u_ref):
    # x_ref      (rows, D)        bf16   rows = B_tile * I
    # w_ref      (D, JK)          bf16   shared projection weight (torch W[0], flat)
    # mgrp_ref   (JK, JK)         bf16   0/1 "same capsule-j group of K lanes"
    # spool_ref  (B_tile, rows)   bf16   0/1 "row r belongs to batch b" pooler
    # sbcast_ref (rows, B_tile)   bf16   spool^T (broadcast per-batch v to rows)
    # v_ref      (B_tile, JK)     f32    output capsules, lane-dense
    # u_ref      (rows, JK)       f32    VMEM scratch holding u_hat
    J = NUM_CAPSULE
    K = DIM_CAPSULE

    # u_hat projection: one lane-dense MXU matmul (bf16 in, f32 acc), staged in
    # VMEM scratch so large tiles reload it with cheap vld instead of spilling.
    u_ref[...] = jnp.dot(x_ref[...], w_ref[...], preferred_element_type=jnp.float32)

    m_grp = mgrp_ref[...]          # bf16 constants, streamed straight to the MXU
    s_pool = spool_ref[...]
    s_bcast = sbcast_ref[...]

    eps = jnp.float32(T_EPSILON)
    k_f = jnp.float32(K)
    inv_j = jnp.float32(1.0 / J)

    v = None
    b_rep = None                   # routing logits, repeated-along-K-lanes layout

    for r in range(ROUTINGS):      # static unroll (ROUTINGS is small & fixed)
        u = u_ref[...]
        if r == 0:
            # softmax of all-zero logits over J == 1/J exactly; fold the scalar
            # into the pooled sum instead of materializing c_rep / cu.
            s = inv_j * jnp.dot(s_pool, u.astype(jnp.bfloat16),
                                preferred_element_type=jnp.float32)
        else:
            # softmax over the capsule axis J on the repeated layout:
            # lane-max == max over J; lane-sum(exp) == K * sum_J exp (1/K fixup).
            m = jnp.max(b_rep, axis=-1, keepdims=True)
            e = jnp.exp(b_rep - m)
            z = jnp.sum(e, axis=-1, keepdims=True)
            c_rep = e * (k_f * pl.reciprocal(z, approx=True))       # EUP slot
            cu = (c_rep * u).astype(jnp.bfloat16)
            s = jnp.dot(s_pool, cu, preferred_element_type=jnp.float32)  # sum over I
        # per-capsule ||s||^2 replicated across each group's K lanes
        n2 = jnp.dot((s * s).astype(jnp.bfloat16), m_grp,
                     preferred_element_type=jnp.float32)
        v = s * jax.lax.rsqrt(n2 + eps)                # squash == s / sqrt(n2+eps)
        if r < ROUTINGS - 1:
            vb = jnp.dot(s_bcast, v.astype(jnp.bfloat16),
                         preferred_element_type=jnp.float32)              # (rows, JK)
            b_rep = jnp.dot((vb * u).astype(jnp.bfloat16), m_grp,
                            preferred_element_type=jnp.float32)           # <v_j, u_hat_ij>

    v_ref[...] = v.astype(v_ref.dtype)


def _pick_batch_tile(B, I, target_rows=512):
    """Pick B_tile: whole batch if small; else the largest 8-aligned divisor of B
    whose B_tile*I fits the row target (8-aligned => unmasked lane-dense output
    stores and (8,128)-legal blocks). Fallback: single whole-array tile."""
    if B * I <= target_rows:
        return B
    cands = [d for d in range(8, B, 8) if B % d == 0 and d * I <= target_rows]
    return max(cands) if cands else B


def caps_layer_pallas(x, w_flat):
    """x: (B, I, D) float32; w_flat: (D, J*K) float32 == torch W[0]."""
    B, I, D = x.shape
    JK = w_flat.shape[-1]
    J, K = NUM_CAPSULE, DIM_CAPSULE

    B_tile = _pick_batch_tile(B, I)
    rows = B_tile * I
    num_tiles = B // B_tile

    # MXU operands in bf16 (halves HBM traffic for x/w too); accumulation is f32.
    x2d = x.reshape(B * I, D).astype(jnp.bfloat16)
    w_bf = w_flat.astype(jnp.bfloat16)

    # Host-built 0/1 selector constants (exact in bf16).
    lane = np.arange(JK)
    m_grp = (lane[:, None] // K == lane[None, :] // K).astype(np.float32)       # (JK, JK)
    row = np.arange(rows)
    s_pool = (np.arange(B_tile)[:, None] == row[None, :] // I).astype(np.float32)  # (B_tile, rows)
    s_bcast = s_pool.T.copy()                                                     # (rows, B_tile)
    m_grp = jnp.asarray(m_grp, dtype=jnp.bfloat16)
    s_pool = jnp.asarray(s_pool, dtype=jnp.bfloat16)
    s_bcast = jnp.asarray(s_bcast, dtype=jnp.bfloat16)

    # Advisory cost estimate: projection + 4 routing iterations.
    flops = (2 * B * I * D * JK                                   # u projection
             + ROUTINGS * (2 * B * B_tile * I * JK + 2 * B * JK * JK)       # pool + ||s||^2
             + (ROUTINGS - 1) * (2 * B * I * B_tile * JK + 2 * B * I * JK * JK))  # bcast + b update
    transcendentals = ((ROUTINGS - 1) * B * I * (JK + 1)          # exp + reciprocal
                       + ROUTINGS * B * JK)                       # rsqrt
    bytes_accessed = (x2d.size * 2 + w_bf.size * 2 + m_grp.size * 2
                      + s_pool.size * 2 + s_bcast.size * 2 + B * JK * 4)
    cost = pl.CostEstimate(flops=int(flops),
                           transcendentals=int(transcendentals),
                           bytes_accessed=int(bytes_accessed))

    v_flat = pl.pallas_call(
        _caps_kernel,
        out_shape=jax.ShapeDtypeStruct((B, JK), jnp.float32),
        grid=(num_tiles,),
        in_specs=[
            pl.BlockSpec((rows, D), lambda i: (i, 0)),          # x tile (rows, D)
            pl.BlockSpec((D, JK), lambda i: (0, 0)),            # shared weight
            pl.BlockSpec((JK, JK), lambda i: (0, 0)),           # m_grp constant
            pl.BlockSpec((B_tile, rows), lambda i: (0, 0)),     # s_pool constant
            pl.BlockSpec((rows, B_tile), lambda i: (0, 0)),     # s_bcast constant
        ],
        out_specs=pl.BlockSpec((B_tile, JK), lambda i: (i, 0)),  # lane-dense output
        scratch_shapes=[pltpu.VMEM((rows, JK), jnp.float32)],    # staged u_hat
        compiler_params=pltpu.CompilerParams(
            dimension_semantics=("parallel",)),                  # batch-independent
        cost_estimate=cost,
    )(x2d, w_bf, m_grp, s_pool, s_bcast)
    return v_flat.reshape(B, J, K)


def caps_layer_ref(x, w_flat):
    # Pure-JAX f32 reference replicating the torch forward exactly.
    u = jnp.matmul(x, w_flat)                                        # (B, I, J*K)
    B, I, _ = u.shape
    u = u.reshape(B, I, NUM_CAPSULE, DIM_CAPSULE).transpose(0, 2, 1, 3)  # (B, J, I, K)
    b = jnp.zeros(u.shape[:-1], jnp.float32)                         # (B, J, I)
    v = None
    for r in range(ROUTINGS):
        c = jax.nn.softmax(b, axis=1)
        s = jnp.einsum('bji,bjik->bjk', c, u)
        v = s / jnp.sqrt(jnp.sum(s ** 2, axis=-1, keepdims=True) + T_EPSILON)
        if r < ROUTINGS - 1:
            b = jnp.einsum('bjk,bjik->bji', v, u)
    return v


if __name__ == "__main__":
    key = jax.random.PRNGKey(0)
    kx, kw = jax.random.split(key)

    # Deterministic xavier-normal init for W (torch shape (1, D, J*K)); pass it flat (D, J*K).
    fan_in = INPUT_DIM_CAPSULE * NUM_CAPSULE * DIM_CAPSULE
    fan_out = 1 * NUM_CAPSULE * DIM_CAPSULE
    std = float(np.sqrt(2.0 / (fan_in + fan_out)))
    w_flat = std * jax.random.normal(
        kw, (INPUT_DIM_CAPSULE, NUM_CAPSULE * DIM_CAPSULE), dtype=jnp.float32)

    x = jax.random.normal(
        kx, (BATCH, INPUT_NUM_CAPSULE, INPUT_DIM_CAPSULE), dtype=jnp.float32)

    out = caps_layer_pallas(x, w_flat)
    out = jax.block_until_ready(out)

    ref = jax.block_until_ready(caps_layer_ref(x, w_flat))
    # bf16 MXU operands + approx reciprocal vs. f32 reference -> loose tolerance.
    np.testing.assert_allclose(np.asarray(out), np.asarray(ref), rtol=2e-2, atol=2e-2)

    print("KERNEL_OK")
</pallas_src>

<mosaic_0001>
module attributes {stable_mosaic.version = 11 : i64} {
  func.func @_caps_kernel(%arg0: i32, %arg1: memref<16x32xbf16, #tpu.memory_space<vmem>>, %arg2: memref<32x128xbf16, #tpu.memory_space<vmem>>, %arg3: memref<128x128xbf16, #tpu.memory_space<vmem>>, %arg4: memref<2x16xbf16, #tpu.memory_space<vmem>>, %arg5: memref<16x2xbf16, #tpu.memory_space<vmem>>, %arg6: memref<2x128xf32, #tpu.memory_space<vmem>>, %arg7: memref<16x128xf32, #tpu.memory_space<vmem>>) attributes {dimension_semantics = [#tpu.dimension_semantics<parallel>], iteration_bounds = array<i64: 1>, scalar_prefetch = 0 : i64, scratch_operands = 1 : i64, tpu.core_type = #tpu.core_type<tc>, window_params = [{transform_indices = @transform_0, window_bounds = array<i64: 16, 32>}, {pipeline_mode = #tpu.pipeline_mode<synchronous>, transform_indices = @transform_1, window_bounds = array<i64: 32, 128>}, {pipeline_mode = #tpu.pipeline_mode<synchronous>, transform_indices = @transform_2, window_bounds = array<i64: 128, 128>}, {pipeline_mode = #tpu.pipeline_mode<synchronous>, transform_indices = @transform_3, window_bounds = array<i64: 2, 16>}, {pipeline_mode = #tpu.pipeline_mode<synchronous>, transform_indices = @transform_4, window_bounds = array<i64: 16, 2>}, {transform_indices = @transform_5, window_bounds = array<i64: 2, 128>}]} {
    %c0 = arith.constant 0 : index
    %c0_0 = arith.constant 0 : index
    %0 = vector.load %arg1[%c0, %c0_0] : memref<16x32xbf16, #tpu.memory_space<vmem>>, vector<16x32xbf16>
    %c0_1 = arith.constant 0 : index
    %c0_2 = arith.constant 0 : index
    %1 = vector.load %arg2[%c0_1, %c0_2] : memref<32x128xbf16, #tpu.memory_space<vmem>>, vector<32x128xbf16>
    %cst = arith.constant dense<0.000000e+00> : vector<16x128xf32>
    %2 = tpu.matmul %0, %1, %cst {dimension_numbers = #tpu.dot_dimension_numbers<[1], [0], [0], [1], [0, 0, 1, 1], [], []>} : vector<16x32xbf16>, vector<32x128xbf16>, vector<16x128xf32> -> vector<16x128xf32>
    %c0_3 = arith.constant 0 : index
    %c0_4 = arith.constant 0 : index
    %3 = vector.load %arg7[%c0_3, %c0_4] : memref<16x128xf32, #tpu.memory_space<vmem>>, vector<16x128xf32>
    tpu.vector_store %arg7[%c0_3, %c0_4], %2 {strides = array<i32>} : memref<16x128xf32, #tpu.memory_space<vmem>>, vector<16x128xf32>,
    %c0_5 = arith.constant 0 : index
    %c0_6 = arith.constant 0 : index
    %4 = vector.load %arg3[%c0_5, %c0_6] : memref<128x128xbf16, #tpu.memory_space<vmem>>, vector<128x128xbf16>
    %c0_7 = arith.constant 0 : index
    %c0_8 = arith.constant 0 : index
    %5 = vector.load %arg4[%c0_7, %c0_8] : memref<2x16xbf16, #tpu.memory_space<vmem>>, vector<2x16xbf16>
    %c0_9 = arith.constant 0 : index
    %c0_10 = arith.constant 0 : index
    %6 = vector.load %arg5[%c0_9, %c0_10] : memref<16x2xbf16, #tpu.memory_space<vmem>>, vector<16x2xbf16>
    %c0_11 = arith.constant 0 : index
    %c0_12 = arith.constant 0 : index
    %7 = vector.load %arg7[%c0_11, %c0_12] : memref<16x128xf32, #tpu.memory_space<vmem>>, vector<16x128xf32>
    %8 = arith.truncf %7 : vector<16x128xf32> to vector<16x128xbf16>
    %cst_13 = arith.constant dense<0.000000e+00> : vector<2x128xf32>
    %9 = tpu.matmul %5, %8, %cst_13 {dimension_numbers = #tpu.dot_dimension_numbers<[1], [0], [0], [1], [0, 0, 1, 1], [], []>} : vector<2x16xbf16>, vector<16x128xbf16>, vector<2x128xf32> -> vector<2x128xf32>
    %cst_14 = arith.constant 1.250000e-01 : f32
    %10 = vector.broadcast %cst_14 : f32 to vector<2x128xf32>
    %11 = arith.mulf %10, %9 : vector<2x128xf32>
    %12 = arith.mulf %11, %11 : vector<2x128xf32>
    %13 = arith.truncf %12 : vector<2x128xf32> to vector<2x128xbf16>
    %cst_15 = arith.constant dense<0.000000e+00> : vector<2x128xf32>
    %14 = tpu.matmul %13, %4, %cst_15 {dimension_numbers = #tpu.dot_dimension_numbers<[1], [0], [0], [1], [0, 0, 1, 1], [], []>} : vector<2x128xbf16>, vector<128x128xbf16>, vector<2x128xf32> -> vector<2x128xf32>
    %cst_16 = arith.constant 1.000000e-07 : f32
    %15 = vector.broadcast %cst_16 : f32 to vector<2x128xf32>
    %16 = arith.addf %14, %15 : vector<2x128xf32>
    %17 = math.rsqrt %16 : vector<2x128xf32>
    %18 = arith.mulf %11, %17 : vector<2x128xf32>
    %19 = arith.truncf %18 : vector<2x128xf32> to vector<2x128xbf16>
    %cst_17 = arith.constant dense<0.000000e+00> : vector<16x128xf32>
    %20 = tpu.matmul %6, %19, %cst_17 {dimension_numbers = #tpu.dot_dimension_numbers<[1], [0], [0], [1], [0, 0, 1, 1], [], []>} : vector<16x2xbf16>, vector<2x128xbf16>, vector<16x128xf32> -> vector<16x128xf32>
    %21 = arith.mulf %20, %7 : vector<16x128xf32>
    %22 = arith.truncf %21 : vector<16x128xf32> to vector<16x128xbf16>
    %cst_18 = arith.constant dense<0.000000e+00> : vector<16x128xf32>
    %23 = tpu.matmul %22, %4, %cst_18 {dimension_numbers = #tpu.dot_dimension_numbers<[1], [0], [0], [1], [0, 0, 1, 1], [], []>} : vector<16x128xbf16>, vector<128x128xbf16>, vector<16x128xf32> -> vector<16x128xf32>
    %c0_19 = arith.constant 0 : index
    %c0_20 = arith.constant 0 : index
    %24 = vector.load %arg7[%c0_19, %c0_20] : memref<16x128xf32, #tpu.memory_space<vmem>>, vector<16x128xf32>
    %cst_21 = arith.constant dense<0xFF800000> : vector<16xf32>
    %25 = vector.multi_reduction <maximumf>, %23, %cst_21 [1] : vector<16x128xf32> to vector<16xf32>
    %26 = vector.shape_cast %25 : vector<16xf32> to vector<16x1xf32>
    %27 = vector.broadcast %26 : vector<16x1xf32> to vector<16x128xf32>
    %28 = arith.subf %23, %27 : vector<16x128xf32>
    %29 = math.exp %28 : vector<16x128xf32>
    %cst_22 = arith.constant dense<0.000000e+00> : vector<16xf32>
    %30 = vector.multi_reduction <add>, %29, %cst_22 [1] : vector<16x128xf32> to vector<16xf32>
    %31 = vector.shape_cast %30 : vector<16xf32> to vector<16x1xf32>
    %32 = tpu.reciprocal %31 {approx = true} : vector<16x1xf32> -> vector<16x1xf32>
    %cst_23 = arith.constant 1.600000e+01 : f32
    %33 = vector.broadcast %cst_23 : f32 to vector<16x1xf32>
    %34 = arith.mulf %33, %32 : vector<16x1xf32>
    %35 = vector.broadcast %34 : vector<16x1xf32> to vector<16x128xf32>
    %36 = arith.mulf %29, %35 : vector<16x128xf32>
    %37 = arith.mulf %36, %24 : vector<16x128xf32>
    %38 = arith.truncf %37 : vector<16x128xf32> to vector<16x128xbf16>
    %cst_24 = arith.constant dense<0.000000e+00> : vector<2x128xf32>
    %39 = tpu.matmul %5, %38, %cst_24 {dimension_numbers = #tpu.dot_dimension_numbers<[1], [0], [0], [1], [0, 0, 1, 1], [], []>} : vector<2x16xbf16>, vector<16x128xbf16>, vector<2x128xf32> -> vector<2x128xf32>
    %40 = arith.mulf %39, %39 : vector<2x128xf32>
    %41 = arith.truncf %40 : vector<2x128xf32> to vector<2x128xbf16>
    %cst_25 = arith.constant dense<0.000000e+00> : vector<2x128xf32>
    %42 = tpu.matmul %41, %4, %cst_25 {dimension_numbers = #tpu.dot_dimension_numbers<[1], [0], [0], [1], [0, 0, 1, 1], [], []>} : vector<2x128xbf16>, vector<128x128xbf16>, vector<2x128xf32> -> vector<2x128xf32>
    %cst_26 = arith.constant 1.000000e-07 : f32
    %43 = vector.broadcast %cst_26 : f32 to vector<2x128xf32>
    %44 = arith.addf %42, %43 : vector<2x128xf32>
    %45 = math.rsqrt %44 : vector<2x128xf32>
    %46 = arith.mulf %39, %45 : vector<2x128xf32>
    %47 = arith.truncf %46 : vector<2x128xf32> to vector<2x128xbf16>
    %cst_27 = arith.constant dense<0.000000e+00> : vector<16x128xf32>
    %48 = tpu.matmul %6, %47, %cst_27 {dimension_numbers = #tpu.dot_dimension_numbers<[1], [0], [0], [1], [0, 0, 1, 1], [], []>} : vector<16x2xbf16>, vector<2x128xbf16>, vector<16x128xf32> -> vector<16x128xf32>
    %49 = arith.mulf %48, %24 : vector<16x128xf32>
    %50 = arith.truncf %49 : vector<16x128xf32> to vector<16x128xbf16>
    %cst_28 = arith.constant dense<0.000000e+00> : vector<16x128xf32>
    %51 = tpu.matmul %50, %4, %cst_28 {dimension_numbers = #tpu.dot_dimension_numbers<[1], [0], [0], [1], [0, 0, 1, 1], [], []>} : vector<16x128xbf16>, vector<128x128xbf16>, vector<16x128xf32> -> vector<16x128xf32>
    %c0_29 = arith.constant 0 : index
    %c0_30 = arith.constant 0 : index
    %52 = vector.load %arg7[%c0_29, %c0_30] : memref<16x128xf32, #tpu.memory_space<vmem>>, vector<16x128xf32>
    %cst_31 = arith.constant dense<0xFF800000> : vector<16xf32>
    %53 = vector.multi_reduction <maximumf>, %51, %cst_31 [1] : vector<16x128xf32> to vector<16xf32>
    %54 = vector.shape_cast %53 : vector<16xf32> to vector<16x1xf32>
    %55 = vector.broadcast %54 : vector<16x1xf32> to vector<16x128xf32>
    %56 = arith.subf %51, %55 : vector<16x128xf32>
    %57 = math.exp %56 : vector<16x128xf32>
    %cst_32 = arith.constant dense<0.000000e+00> : vector<16xf32>
    %58 = vector.multi_reduction <add>, %57, %cst_32 [1] : vector<16x128xf32> to vector<16xf32>
    %59 = vector.shape_cast %58 : vector<16xf32> to vector<16x1xf32>
    %60 = tpu.reciprocal %59 {approx = true} : vector<16x1xf32> -> vector<16x1xf32>
    %cst_33 = arith.constant 1.600000e+01 : f32
    %61 = vector.broadcast %cst_33 : f32 to vector<16x1xf32>
    %62 = arith.mulf %61, %60 : vector<16x1xf32>
    %63 = vector.broadcast %62 : vector<16x1xf32> to vector<16x128xf32>
    %64 = arith.mulf %57, %63 : vector<16x128xf32>
    %65 = arith.mulf %64, %52 : vector<16x128xf32>
    %66 = arith.truncf %65 : vector<16x128xf32> to vector<16x128xbf16>
    %cst_34 = arith.constant dense<0.000000e+00> : vector<2x128xf32>
    %67 = tpu.matmul %5, %66, %cst_34 {dimension_numbers = #tpu.dot_dimension_numbers<[1], [0], [0], [1], [0, 0, 1, 1], [], []>} : vector<2x16xbf16>, vector<16x128xbf16>, vector<2x128xf32> -> vector<2x128xf32>
    %68 = arith.mulf %67, %67 : vector<2x128xf32>
    %69 = arith.truncf %68 : vector<2x128xf32> to vector<2x128xbf16>
    %cst_35 = arith.constant dense<0.000000e+00> : vector<2x128xf32>
    %70 = tpu.matmul %69, %4, %cst_35 {dimension_numbers = #tpu.dot_dimension_numbers<[1], [0], [0], [1], [0, 0, 1, 1], [], []>} : vector<2x128xbf16>, vector<128x128xbf16>, vector<2x128xf32> -> vector<2x128xf32>
    %cst_36 = arith.constant 1.000000e-07 : f32
    %71 = vector.broadcast %cst_36 : f32 to vector<2x128xf32>
    %72 = arith.addf %70, %71 : vector<2x128xf32>
    %73 = math.rsqrt %72 : vector<2x128xf32>
    %74 = arith.mulf %67, %73 : vector<2x128xf32>
    %75 = arith.truncf %74 : vector<2x128xf32> to vector<2x128xbf16>
    %cst_37 = arith.constant dense<0.000000e+00> : vector<16x128xf32>
    %76 = tpu.matmul %6, %75, %cst_37 {dimension_numbers = #tpu.dot_dimension_numbers<[1], [0], [0], [1], [0, 0, 1, 1], [], []>} : vector<16x2xbf16>, vector<2x128xbf16>, vector<16x128xf32> -> vector<16x128xf32>
    %77 = arith.mulf %76, %52 : vector<16x128xf32>
    %78 = arith.truncf %77 : vector<16x128xf32> to vector<16x128xbf16>
    %cst_38 = arith.constant dense<0.000000e+00> : vector<16x128xf32>
    %79 = tpu.matmul %78, %4, %cst_38 {dimension_numbers = #tpu.dot_dimension_numbers<[1], [0], [0], [1], [0, 0, 1, 1], [], []>} : vector<16x128xbf16>, vector<128x128xbf16>, vector<16x128xf32> -> vector<16x128xf32>
    %c0_39 = arith.constant 0 : index
    %c0_40 = arith.constant 0 : index
    %80 = vector.load %arg7[%c0_39, %c0_40] : memref<16x128xf32, #tpu.memory_space<vmem>>, vector<16x128xf32>
    %cst_41 = arith.constant dense<0xFF800000> : vector<16xf32>
    %81 = vector.multi_reduction <maximumf>, %79, %cst_41 [1] : vector<16x128xf32> to vector<16xf32>
    %82 = vector.shape_cast %81 : vector<16xf32> to vector<16x1xf32>
    %83 = vector.broadcast %82 : vector<16x1xf32> to vector<16x128xf32>
    %84 = arith.subf %79, %83 : vector<16x128xf32>
    %85 = math.exp %84 : vector<16x128xf32>
    %cst_42 = arith.constant dense<0.000000e+00> : vector<16xf32>
    %86 = vector.multi_reduction <add>, %85, %cst_42 [1] : vector<16x128xf32> to vector<16xf32>
    %87 = vector.shape_cast %86 : vector<16xf32> to vector<16x1xf32>
    %88 = tpu.reciprocal %87 {approx = true} : vector<16x1xf32> -> vector<16x1xf32>
    %cst_43 = arith.constant 1.600000e+01 : f32
    %89 = vector.broadcast %cst_43 : f32 to vector<16x1xf32>
    %90 = arith.mulf %89, %88 : vector<16x1xf32>
    %91 = vector.broadcast %90 : vector<16x1xf32> to vector<16x128xf32>
    %92 = arith.mulf %85, %91 : vector<16x128xf32>
    %93 = arith.mulf %92, %80 : vector<16x128xf32>
    %94 = arith.truncf %93 : vector<16x128xf32> to vector<16x128xbf16>
    %cst_44 = arith.constant dense<0.000000e+00> : vector<2x128xf32>
    %95 = tpu.matmul %5, %94, %cst_44 {dimension_numbers = #tpu.dot_dimension_numbers<[1], [0], [0], [1], [0, 0, 1, 1], [], []>} : vector<2x16xbf16>, vector<16x128xbf16>, vector<2x128xf32> -> vector<2x128xf32>
    %96 = arith.mulf %95, %95 : vector<2x128xf32>
    %97 = arith.truncf %96 : vector<2x128xf32> to vector<2x128xbf16>
    %cst_45 = arith.constant dense<0.000000e+00> : vector<2x128xf32>
    %98 = tpu.matmul %97, %4, %cst_45 {dimension_numbers = #tpu.dot_dimension_numbers<[1], [0], [0], [1], [0, 0, 1, 1], [], []>} : vector<2x128xbf16>, vector<128x128xbf16>, vector<2x128xf32> -> vector<2x128xf32>
    %cst_46 = arith.constant 1.000000e-07 : f32
    %99 = vector.broadcast %cst_46 : f32 to vector<2x128xf32>
    %100 = arith.addf %98, %99 : vector<2x128xf32>
    %101 = math.rsqrt %100 : vector<2x128xf32>
    %102 = arith.mulf %95, %101 : vector<2x128xf32>
    %c0_47 = arith.constant 0 : index
    %c0_48 = arith.constant 0 : index
    %103 = vector.load %arg6[%c0_47, %c0_48] : memref<2x128xf32, #tpu.memory_space<vmem>>, vector<2x128xf32>
    tpu.vector_store %arg6[%c0_47, %c0_48], %102 {strides = array<i32>} : memref<2x128xf32, #tpu.memory_space<vmem>>, vector<2x128xf32>,
    return
  }
  func.func @transform_0(%arg0: i32) -> (i32, i32) {
    %c0_i32 = arith.constant 0 : i32
    %c0_i32_0 = arith.constant 0 : i32
    return %arg0, %c0_i32 : i32, i32
  }
  func.func @transform_1(%arg0: i32) -> (i32, i32) {
    %c0_i32 = arith.constant 0 : i32
    %c0_i32_0 = arith.constant 0 : i32
    %c0_i32_1 = arith.constant 0 : i32
    return %c0_i32, %c0_i32_0 : i32, i32
  }
  func.func @transform_2(%arg0: i32) -> (i32, i32) {
    %c0_i32 = arith.constant 0 : i32
    %c0_i32_0 = arith.constant 0 : i32
    %c0_i32_1 = arith.constant 0 : i32
    return %c0_i32, %c0_i32_0 : i32, i32
  }
  func.func @transform_3(%arg0: i32) -> (i32, i32) {
    %c0_i32 = arith.constant 0 : i32
    %c0_i32_0 = arith.constant 0 : i32
    %c0_i32_1 = arith.constant 0 : i32
    return %c0_i32, %c0_i32_0 : i32, i32
  }
  func.func @transform_4(%arg0: i32) -> (i32, i32) {
    %c0_i32 = arith.constant 0 : i32
    %c0_i32_0 = arith.constant 0 : i32
    %c0_i32_1 = arith.constant 0 : i32
    return %c0_i32, %c0_i32_0 : i32, i32
  }
  func.func @transform_5(%arg0: i32) -> (i32, i32) {
    %c0_i32 = arith.constant 0 : i32
    %c0_i32_0 = arith.constant 0 : i32
    return %arg0, %c0_i32 : i32, i32
  }
}

</mosaic_0001>

<bundles_post_ra>
// kernel: tpu_custom_call.1
= control target key start
LH: loop header
LB: loop body
LE: loop exit
PB: predicated region body
PF: predicated region fallthrough
CT: control target
= control target key end

     0   :  { %10 = vsyncpa [#allocation4], 0  ;;  %s878_s0 = inlined_call_operand.vmem [shape: bf16[16,32], index: 0, kind: input, shape index: {}]   ;;  %s879_s1 = inlined_call_operand.hbm [shape: bf16[32,128], index: 1, kind: input, shape index: {}]   ;;  %s880_s2 = inlined_call_operand.hbm [shape: bf16[128,128], index: 2, kind: input, shape index: {}]   ;;  %s881_s3 = inlined_call_operand.vmem [shape: bf16[2,16], index: 3, kind: input, shape index: {}]   ;;  %s882_s4 = inlined_call_operand.vmem [shape: bf16[16,2], index: 4, kind: input, shape index: {}]   ;;  %s883_s5 = inlined_call_operand.hbm [shape: f32[2,128], index: 5, kind: output, shape index: {}]  }
   0x1   :  { %11 = vsyncpa [#allocation7], 0 }
   0x2   :  { %12 = vsyncpa [#allocation5], 0  ;;  %s19_s20 = sshll.u32 %s879_s1, 4  ;;  %s714_s21 = smov [#allocation3]   ;;  %s20_s20 = int_to_ptr.hbm [resolvable:$true] %s19_s20 }
   0x3   :  { %s21_s22 = sshll.u32 %s714_s21, 4  ;;  %s32_s25 = sshll.u32 %s880_s2, 4  ;;  %s22_s22 = int_to_ptr.vmem [resolvable:$true] %s21_s22  ;;  %s33_s25 = int_to_ptr.hbm [resolvable:$true] %s32_s25 }
   0x4   :  { %s715_s26 = smov 64   ;;  %s716_s27 = smov 4  }
   0x5   :  { %27 = dma.hbm_to_vmem [thread:$0]  %s20_s20, 256, %s22_s22, [#allocation4], %s715_s26, %s715_s26, %s716_s27  }
   0x6   :  { %s717_s28 = smov [#allocation6]  }
   0x7   :  { %s34_s29 = sshll.u32 %s717_s28, 4  ;;  %s35_s29 = int_to_ptr.vmem [resolvable:$true] %s34_s29 }
   0x8   :  { %40 = dma.hbm_to_vmem [thread:$0]  %s33_s25, 1024, %s35_s29, [#allocation7], %s715_s26, %s715_s26, %s716_s27  }
   0x9   :  { %708 = dma.done.wait [#allocation4], 256  }
   0xa   :  { %709 = vsyncadd [#allocation4], 4294967040 }
   0xb   :  { %710 = dma.done.wait [#allocation7], 1024  }
   0xc   :  { %711 = vsyncadd [#allocation7], 4294966272  ;;  %v589_v0 = vld [vmem:[#allocation3 + $0x8] sm:$0xff]  ;;  %v588_v1 = vld [vmem:[#allocation3] sm:$0xff]  ;;  %vm77_vm0 = vcmask 261120   ;;  %vm119_vm1 = vcmask 130048  }
   0xd   :  { %87 = vmatpush.bf16.msra.mxu0 %v589_v0  ;;  %v587_v2 = vld [vmem:[%s878_s0] sm:$0xff]  ;;  %v758_v3 = vld [vmem:[#allocation6 + $0x38] sm:$0xff]  ;;  %v765_v5 = vld [vmem:[#allocation6 + $0x28] sm:$0xff]  ;;  %vm221_vm5 = vcmask 1040384   ;;  %vm217_vm6 = vcmask 15360   ;;  %s520_s10 = sshll.u32 %s883_s5, 4  ;;  %s521_s10 = int_to_ptr.hbm [resolvable:$true] %s520_s10 }
   0xe   :  { %187 = vmatpush.bf16.msra.mxu2 %v758_v3  ;;  %v761_v4 = vld [vmem:[#allocation6 + $0x30] sm:$0xff]  ;;  %v769_v6 = vld [vmem:[#allocation6 + $0x20] sm:$0xff]  ;;  %v773_v7 = vld [vmem:[#allocation6 + $0x18] sm:$0xff] }
   0xf   :  { %v779_v9 = vld [vmem:[#allocation6 + $0x10] sm:$0xff]  ;;  %v801_v13 = vld [vmem:[#allocation6 + $0x8] sm:$0xff]  ;;  %v805_v14 = vld [vmem:[#allocation6] sm:$0xff] }
  0x10   :  { %v791_v12 = vld [vmem:[%s881_s3] sm:$0x1] }
  0x11   :  { %88 = vmatpush.bf16.msra.mxu0 %v588_v1  ;;  %v831_v33 = vld [vmem:[%s882_s4] sm:$0xff]  ;;  %s718_s4 = smov [#allocation8]  }
  0x12   :  { %188 = vmatpush.bf16.msra.mxu2 %v761_v4  ;;  %s518_s7 = sshll.u32 %s718_s4, 4  ;;  %s519_s7 = int_to_ptr.vmem [resolvable:$true] %s518_s7 }
  0x14   :  { %543 = vmatmul.msk.bf16.vlgmr.msra.gmra.mxu0 %vm77_vm0, %v587_v2 }
  0x15   :  { %294 = vmatpush.bf16.msrb.mxu0 %v758_v3 }
  0x16   :  { %189 = vmatpush.bf16.msra.mxu2 %v765_v5 }
  0x19   :  { %295 = vmatpush.bf16.msrb.mxu0 %v761_v4 }
  0x1a   :  { %190 = vmatpush.bf16.msra.mxu2 %v769_v6 }
  0x1d   :  { %296 = vmatpush.bf16.msrb.mxu0 %v765_v5 }
  0x1e   :  { %191 = vmatpush.bf16.msra.mxu2 %v773_v7 }
  0x21   :  { %297 = vmatpush.bf16.msrb.mxu0 %v769_v6 }
  0x22   :  { %192 = vmatpush.bf16.msra.mxu2 %v779_v9 }
  0x25   :  { %298 = vmatpush.bf16.msrb.mxu0 %v773_v7 }
  0x26   :  { %193 = vmatpush.bf16.msra.mxu2 %v801_v13 }
  0x29   :  { %299 = vmatpush.bf16.msrb.mxu0 %v779_v9 }
  0x2a   :  { %194 = vmatpush.bf16.msra.mxu2 %v805_v14 }
  0x2d   :  { %300 = vmatpush.bf16.msrb.mxu0 %v801_v13 }
  0x2e   :  { %339 = vmatpush.bf16.msrb.mxu2 %v758_v3 }
  0x31   :  { %301 = vmatpush.bf16.msrb.mxu0 %v805_v14 }
  0x32   :  { %340 = vmatpush.bf16.msrb.mxu2 %v761_v4 }
  0x36   :  { %341 = vmatpush.bf16.msrb.mxu2 %v765_v5 }
  0x3a   :  { %342 = vmatpush.bf16.msrb.mxu2 %v769_v6 }
  0x3e   :  { %343 = vmatpush.bf16.msrb.mxu2 %v773_v7 }
  0x42   :  { %344 = vmatpush.bf16.msrb.mxu2 %v779_v9 }
  0x46   :  { %345 = vmatpush.bf16.msrb.mxu2 %v801_v13 }
  0x4a   :  { %346 = vmatpush.bf16.msrb.mxu2 %v805_v14 }
  0x91   :  { %v776_v8 = vpop.f32.mrf.mxu0 }
  0x99   :  { %v784_v10 = vpop.f32.mrf.mxu0 }
  0x9a   :  { %v118_v11 = vpack.c.bf16 %v784_v10, %v776_v8 }
  0x9c   :  { %130 = vmatpush.bf16.msra.mxu1 %v118_v11 }
  0x9f   :  { %544 = vmatmul.msk.bf16.vlgmr.msra.gmra.mxu1 %vm119_vm1, %v791_v12 }
  0xa0   :  { %242 = vmatpush.bf16.msrb.mxu1 %v758_v3 }
  0xa4   :  { %243 = vmatpush.bf16.msrb.mxu1 %v761_v4 }
  0xa8   :  { %244 = vmatpush.bf16.msrb.mxu1 %v765_v5 }
  0xac   :  { %245 = vmatpush.bf16.msrb.mxu1 %v769_v6 }
  0xb0   :  { %246 = vmatpush.bf16.msrb.mxu1 %v773_v7 }
  0xb4   :  { %247 = vmatpush.bf16.msrb.mxu1 %v779_v9 }
  0xb8   :  { %248 = vmatpush.bf16.msrb.mxu1 %v801_v13 }
  0xbc   :  { %249 = vmatpush.bf16.msrb.mxu1 %v805_v14 }
 0x11c   :  { %v132_v15 = vpop.f32.mrf.mxu1 }
 0x11d   :  { %v136_v16 = vmul.f32 0.125, %v132_v15 }
 0x11f   :  { %v137_v17 = vmul.f32 %v136_v16, %v136_v16 }
 0x121   :  { %v138_v18 = vpack.c.bf16 %v137_v17, %v137_v17 }
 0x123   :  { %195 = vmatmul.bf16.vlgmr.msra.gmra.mxu2 %v138_v18 }
 0x124   :  { %v134_v19 = vpop.f32.mrf.mxu1  ;;  %488 = vmatpush.bf16.msra.mxu2 %v758_v3 }
 0x128   :  { %489 = vmatpush.bf16.msra.mxu2 %v761_v4 }
 0x12c   :  { %490 = vmatpush.bf16.msra.mxu2 %v765_v5 }
 0x130   :  { %491 = vmatpush.bf16.msra.mxu2 %v769_v6 }
 0x134   :  { %492 = vmatpush.bf16.msra.mxu2 %v773_v7 }
 0x138   :  { %493 = vmatpush.bf16.msra.mxu2 %v779_v9 }
 0x13c   :  { %494 = vmatpush.bf16.msra.mxu2 %v801_v13 }
 0x140   :  { %495 = vmatpush.bf16.msra.mxu2 %v805_v14 }
 0x1a6   :  { %v196_v20 = vpop.f32.mrf.mxu2 }
 0x1a7   :  { %v197_v21 = vadd.f32 1e-07, %v196_v20 }
 0x1a9   :  { %604 = vrsqrt.f32 %v197_v21  ;;  %vm206_vm3 = vweird.f32 %v197_v21 }
 0x1ae   :  { %v198_v22 = vpop.f32.mrf.mxu2 }
 0x1af   :  { %v605_v23 = vpop.eup %604 }
 0x1b0   :  { %v201_v24 = vmul.f32 %v605_v23, %v197_v21  ;;  %vm207_vm2 = vweird.f32 %v605_v23 }
 0x1b1   :  { %vm208_vm4 = vmor %vm206_vm3, %vm207_vm2 }
 0x1b2   :  { %v202_v25 = vmul.f32 %v605_v23, %v201_v24 }
 0x1b4   :  { %v203_v26 = vmul.f32 0.5, %v202_v25 }
 0x1b6   :  { %v204_v27 = vsub.f32 1.5, %v203_v26 }
 0x1b8   :  { %v205_v28 = vmul.f32 %v605_v23, %v204_v27 }
 0x1ba   :  { %v209_v29 = vsel %vm208_vm4, %v605_v23, %v205_v28 }
 0x1bb   :  { %v210_v30 = vmul.f32 %v209_v29, %v136_v16 }
 0x1bd   :  { %v211_v31 = vpack.c.bf16 %v210_v30, %v210_v30 }
 0x1bf   :  { %v223_v32 = vsel %vm221_vm5, %v211_v31, 0 }
 0x1c0   :  { %232 = vmatpush.bf16.msra.mxu3 %v223_v32 }
 0x1c3   :  { %581 = vmatmul.msk.bf16.vlgmr.msra.gmra.mxu3 %vm217_vm6, %v831_v33 }
 0x246   :  { %v234_v34 = vpop.f32.mrf.mxu3 }
 0x247   :  { %v239_v36 = vmul.f32 %v234_v34, %v776_v8 }
 0x24e   :  { %v236_v35 = vpop.f32.mrf.mxu3 }
 0x24f   :  { %v240_v37 = vmul.f32 %v236_v35, %v784_v10 }
 0x251   :  { %v241_v38 = vpack.c.bf16 %v240_v37, %v239_v36 }
 0x253   :  { %250 = vmatmul.bf16.vlgmr.msrb.gmra.mxu1 %v241_v38 }
 0x2d0   :  { %v251_v39 = vpop.f32.mrf.mxu1 }
 0x2d1   :  { %256 = vmax.xlane.f32.xlu0 %v251_v39 }
 0x2d8   :  { %v253_v40 = vpop.f32.mrf.mxu1 }
 0x2d9   :  { %258 = vmax.xlane.f32.xlu0 %v253_v40 }
 0x344   :  { %v257_v41 = vpop.xlane.xlu0 %256 }
 0x345   :  { %v260_v42 = vsub.f32 %v251_v39, %v257_v41 }
 0x347   :  { %v262_v43 = vmul.f32 1.442695, %v260_v42 }
 0x349   :  { %606 = vpow2.f32 %v262_v43 }
 0x34c   :  { %v259_v44 = vpop.xlane.xlu0 %258 }
 0x34d   :  { %v261_v45 = vsub.f32 %v253_v40, %v259_v44 }
 0x34f   :  { %v607_v46 = vpop.eup %606  ;;  %v264_v47 = vmul.f32 1.442695, %v261_v45 }
 0x350   :  { %266 = vadd.xlane.f32.xlu1 %v607_v46 }
 0x351   :  { %608 = vpow2.f32 %v264_v47 }
 0x357   :  { %v609_v48 = vpop.eup %608 }
 0x358   :  { %268 = vadd.xlane.f32.xlu1 %v609_v48 }
 0x3c3   :  { %v267_v49 = vpop.xlane.xlu1 %266 }
 0x3c4   :  { %610 = vrcp.f32 %v267_v49 }
 0x3ca   :  { %v611_v51 = vpop.eup %610 }
 0x3cb   :  { %v269_v50 = vpop.xlane.xlu1 %268  ;;  %v272_v52 = vmul.f32 16.0, %v611_v51 }
 0x3cc   :  { %612 = vrcp.f32 %v269_v50 }
 0x3cd   :  { %v274_v54 = vmul.f32 %v607_v46, %v272_v52 }
 0x3cf   :  { %v276_v57 = vmul.f32 %v274_v54, %v776_v8 }
 0x3d2   :  { %v613_v53 = vpop.eup %612 }
 0x3d3   :  { %v273_v55 = vmul.f32 16.0, %v613_v53 }
 0x3d5   :  { %v275_v56 = vmul.f32 %v609_v48, %v273_v55 }
 0x3d7   :  { %v277_v58 = vmul.f32 %v275_v56, %v784_v10 }
 0x3d9   :  { %v278_v59 = vpack.c.bf16 %v277_v58, %v276_v57 }
 0x3db   :  { %286 = vmatpush.bf16.msrb.mxu3 %v278_v59 }
 0x3de   :  { %582 = vmatmul.msk.bf16.vlgmr.msrb.gmra.mxu3 %vm119_vm1, %v791_v12 }
 0x461   :  { %v288_v60 = vpop.f32.mrf.mxu3 }
 0x462   :  { %v292_v61 = vmul.f32 %v288_v60, %v288_v60 }
 0x464   :  { %v293_v62 = vpack.c.bf16 %v292_v61, %v292_v61 }
 0x466   :  { %302 = vmatmul.bf16.vlgmr.msrb.gmra.mxu0 %v293_v62 }
 0x469   :  { %v290_v63 = vpop.f32.mrf.mxu3 }
 0x4e3   :  { %v303_v0 = vpop.f32.mrf.mxu0 }
 0x4e4   :  { %v304_v1 = vadd.f32 1e-07, %v303_v0 }
 0x4e6   :  { %614 = vrsqrt.f32 %v304_v1  ;;  %vm313_vm8 = vweird.f32 %v304_v1 }
 0x4eb   :  { %v305_v2 = vpop.f32.mrf.mxu0 }
 0x4ec   :  { %v615_v11 = vpop.eup %614 }
 0x4ed   :  { %v308_v15 = vmul.f32 %v615_v11, %v304_v1  ;;  %vm314_vm7 = vweird.f32 %v615_v11 }
 0x4ee   :  { %vm315_vm9 = vmor %vm313_vm8, %vm314_vm7 }
 0x4ef   :  { %v309_v16 = vmul.f32 %v615_v11, %v308_v15 }
 0x4f1   :  { %v310_v17 = vmul.f32 0.5, %v309_v16 }
 0x4f3   :  { %v311_v18 = vsub.f32 1.5, %v310_v17 }
 0x4f5   :  { %v312_v19 = vmul.f32 %v615_v11, %v311_v18 }
 0x4f7   :  { %v316_v20 = vsel %vm315_vm9, %v615_v11, %v312_v19 }
 0x4f8   :  { %v317_v21 = vmul.f32 %v316_v20, %v288_v60 }
 0x4fa   :  { %v318_v22 = vpack.c.bf16 %v317_v21, %v317_v21 }
 0x4fc   :  { %v320_v23 = vsel %vm221_vm5, %v318_v22, 0 }
 0x4fd   :  { %329 = vmatpush.bf16.msra.mxu3 %v320_v23 }
 0x500   :  { %583 = vmatmul.msk.bf16.vlgmr.msra.gmra.mxu3 %vm217_vm6, %v831_v33 }
 0x501   :  { %391 = vmatpush.bf16.msrb.mxu3 %v758_v3 }
 0x505   :  { %392 = vmatpush.bf16.msrb.mxu3 %v761_v4 }
 0x509   :  { %393 = vmatpush.bf16.msrb.mxu3 %v765_v5 }
 0x50d   :  { %394 = vmatpush.bf16.msrb.mxu3 %v769_v6 }
 0x511   :  { %395 = vmatpush.bf16.msrb.mxu3 %v773_v7 }
 0x515   :  { %396 = vmatpush.bf16.msrb.mxu3 %v779_v9 }
 0x519   :  { %397 = vmatpush.bf16.msrb.mxu3 %v801_v13 }
 0x51d   :  { %398 = vmatpush.bf16.msrb.mxu3 %v805_v14 }
 0x583   :  { %v331_v24 = vpop.f32.mrf.mxu3 }
 0x584   :  { %v336_v26 = vmul.f32 %v331_v24, %v776_v8 }
 0x58b   :  { %v333_v25 = vpop.f32.mrf.mxu3 }
 0x58c   :  { %v337_v27 = vmul.f32 %v333_v25, %v784_v10 }
 0x58e   :  { %v338_v28 = vpack.c.bf16 %v337_v27, %v336_v26 }
 0x590   :  { %347 = vmatmul.bf16.vlgmr.msrb.gmra.mxu2 %v338_v28 }
 0x613   :  { %v348_v29 = vpop.f32.mrf.mxu2 }
 0x614   :  { %353 = vmax.xlane.f32.xlu2 %v348_v29 }
 0x61b   :  { %v350_v30 = vpop.f32.mrf.mxu2 }
 0x61c   :  { %355 = vmax.xlane.f32.xlu2 %v350_v30 }
 0x687   :  { %v354_v31 = vpop.xlane.xlu2 %353 }
 0x688   :  { %v357_v32 = vsub.f32 %v348_v29, %v354_v31 }
 0x68a   :  { %v359_v34 = vmul.f32 1.442695, %v357_v32 }
 0x68c   :  { %616 = vpow2.f32 %v359_v34 }
 0x68f   :  { %v356_v35 = vpop.xlane.xlu2 %355 }
 0x690   :  { %v358_v36 = vsub.f32 %v350_v30, %v356_v35 }
 0x692   :  { %v617_v37 = vpop.eup %616  ;;  %v361_v38 = vmul.f32 1.442695, %v358_v36 }
 0x693   :  { %363 = vadd.xlane.f32.xlu0 %v617_v37 }
 0x694   :  { %618 = vpow2.f32 %v361_v38 }
 0x69a   :  { %v619_v39 = vpop.eup %618 }
 0x69b   :  { %365 = vadd.xlane.f32.xlu1 %v619_v39 }
 0x706   :  { %v364_v40 = vpop.xlane.xlu0 %363 }
 0x707   :  { %620 = vrcp.f32 %v364_v40 }
 0x70d   :  { %v621_v42 = vpop.eup %620 }
 0x70e   :  { %v366_v41 = vpop.xlane.xlu1 %365  ;;  %v369_v43 = vmul.f32 16.0, %v621_v42 }
 0x70f   :  { %622 = vrcp.f32 %v366_v41 }
 0x710   :  { %v371_v45 = vmul.f32 %v617_v37, %v369_v43 }
 0x712   :  { %v373_v48 = vmul.f32 %v371_v45, %v776_v8 }
 0x715   :  { %v623_v44 = vpop.eup %622 }
 0x716   :  { %v370_v46 = vmul.f32 16.0, %v623_v44 }
 0x718   :  { %v372_v47 = vmul.f32 %v619_v39, %v370_v46 }
 0x71a   :  { %v374_v49 = vmul.f32 %v372_v47, %v784_v10 }
 0x71c   :  { %v375_v50 = vpack.c.bf16 %v374_v49, %v373_v48 }
 0x71e   :  { %383 = vmatpush.bf16.msra.mxu1 %v375_v50 }
 0x721   :  { %584 = vmatmul.msk.bf16.vlgmr.msra.gmra.mxu1 %vm119_vm1, %v791_v12 }
 0x722   :  { %436 = vmatpush.bf16.msrb.mxu1 %v758_v3 }
 0x726   :  { %437 = vmatpush.bf16.msrb.mxu1 %v761_v4 }
 0x72a   :  { %438 = vmatpush.bf16.msrb.mxu1 %v765_v5 }
 0x72e   :  { %439 = vmatpush.bf16.msrb.mxu1 %v769_v6 }
 0x732   :  { %440 = vmatpush.bf16.msrb.mxu1 %v773_v7 }
 0x736   :  { %441 = vmatpush.bf16.msrb.mxu1 %v779_v9 }
 0x73a   :  { %442 = vmatpush.bf16.msrb.mxu1 %v801_v13 }
 0x73e   :  { %443 = vmatpush.bf16.msrb.mxu1 %v805_v14 }
 0x79e   :  { %v385_v51 = vpop.f32.mrf.mxu1 }
 0x79f   :  { %v389_v52 = vmul.f32 %v385_v51, %v385_v51 }
 0x7a1   :  { %v390_v3 = vpack.c.bf16 %v389_v52, %v389_v52 }
 0x7a3   :  { %399 = vmatmul.bf16.vlgmr.msrb.gmra.mxu3 %v390_v3 }
 0x7a6   :  { %v387_v53 = vpop.f32.mrf.mxu1 }
 0x826   :  { %v400_v54 = vpop.f32.mrf.mxu3 }
 0x827   :  { %v401_v55 = vadd.f32 1e-07, %v400_v54 }
 0x829   :  { %624 = vrsqrt.f32 %v401_v55  ;;  %vm410_vm11 = vweird.f32 %v401_v55 }
 0x82e   :  { %v402_v4 = vpop.f32.mrf.mxu3 }
 0x82f   :  { %v625_v5 = vpop.eup %624 }
 0x830   :  { %v405_v56 = vmul.f32 %v625_v5, %v401_v55  ;;  %vm411_vm10 = vweird.f32 %v625_v5 }
 0x831   :  { %vm412_vm12 = vmor %vm410_vm11, %vm411_vm10 }
 0x832   :  { %v406_v6 = vmul.f32 %v625_v5, %v405_v56 }
 0x834   :  { %v407_v57 = vmul.f32 0.5, %v406_v6 }
 0x836   :  { %v408_v7 = vsub.f32 1.5, %v407_v57 }
 0x838   :  { %v409_v9 = vmul.f32 %v625_v5, %v408_v7 }
 0x83a   :  { %v413_v13 = vsel %vm412_vm12, %v625_v5, %v409_v9 }
 0x83b   :  { %v414_v14 = vmul.f32 %v413_v13, %v385_v51 }
 0x83d   :  { %v415_v58 = vpack.c.bf16 %v414_v14, %v414_v14 }
 0x83f   :  { %v417_v59 = vsel %vm221_vm5, %v415_v58, 0 }
 0x840   :  { %426 = vmatpush.bf16.msra.mxu0 %v417_v59 }
 0x843   :  { %585 = vmatmul.msk.bf16.vlgmr.msra.gmra.mxu0 %vm217_vm6, %v831_v33 }
 0x8c0   :  { %v428_v60 = vpop.f32.mrf.mxu0 }
 0x8c1   :  { %v433_v62 = vmul.f32 %v428_v60, %v776_v8 }
 0x8c8   :  { %v430_v61 = vpop.f32.mrf.mxu0 }
 0x8c9   :  { %v434_v63 = vmul.f32 %v430_v61, %v784_v10 }
 0x8cb   :  { %v435_v0 = vpack.c.bf16 %v434_v63, %v433_v62 }
 0x8cd   :  { %444 = vmatmul.bf16.vlgmr.msrb.gmra.mxu1 %v435_v0 }
 0x94a   :  { %v445_v1 = vpop.f32.mrf.mxu1 }
 0x94b   :  { %450 = vmax.xlane.f32.xlu2 %v445_v1 }
 0x952   :  { %v447_v2 = vpop.f32.mrf.mxu1 }
 0x953   :  { %452 = vmax.xlane.f32.xlu0 %v447_v2 }
 0x9be   :  { %v451_v11 = vpop.xlane.xlu2 %450 }
 0x9bf   :  { %v454_v15 = vsub.f32 %v445_v1, %v451_v11 }
 0x9c1   :  { %v456_v16 = vmul.f32 1.442695, %v454_v15 }
 0x9c3   :  { %626 = vpow2.f32 %v456_v16 }
 0x9c6   :  { %v453_v17 = vpop.xlane.xlu0 %452 }
 0x9c7   :  { %v455_v18 = vsub.f32 %v447_v2, %v453_v17 }
 0x9c9   :  { %v627_v19 = vpop.eup %626  ;;  %v458_v33 = vmul.f32 1.442695, %v455_v18 }
 0x9ca   :  { %460 = vadd.xlane.f32.xlu1 %v627_v19 }
 0x9cb   :  { %628 = vpow2.f32 %v458_v33 }
 0x9d1   :  { %v629_v20 = vpop.eup %628 }
 0x9d2   :  { %462 = vadd.xlane.f32.xlu2 %v629_v20 }
 0xa3d   :  { %v461_v21 = vpop.xlane.xlu1 %460 }
 0xa3e   :  { %630 = vrcp.f32 %v461_v21 }
 0xa44   :  { %v631_v23 = vpop.eup %630 }
 0xa45   :  { %v463_v22 = vpop.xlane.xlu2 %462  ;;  %v466_v24 = vmul.f32 16.0, %v631_v23 }
 0xa46   :  { %632 = vrcp.f32 %v463_v22 }
 0xa47   :  { %v468_v26 = vmul.f32 %v627_v19, %v466_v24 }
 0xa49   :  { %v470_v29 = vmul.f32 %v468_v26, %v776_v8 }
 0xa4c   :  { %v633_v25 = vpop.eup %632 }
 0xa4d   :  { %v467_v27 = vmul.f32 16.0, %v633_v25 }
 0xa4f   :  { %v469_v28 = vmul.f32 %v629_v20, %v467_v27 }
 0xa51   :  { %v471_v30 = vmul.f32 %v469_v28, %v784_v10 }
 0xa53   :  { %v472_v31 = vpack.c.bf16 %v471_v30, %v470_v29 }
 0xa55   :  { %480 = vmatpush.bf16.msrb.mxu0 %v472_v31 }
 0xa58   :  { %586 = vmatmul.msk.bf16.vlgmr.msrb.gmra.mxu0 %vm119_vm1, %v791_v12 }
 0xad5   :  { %v482_v32 = vpop.f32.mrf.mxu0 }
 0xad6   :  { %v486_v34 = vmul.f32 %v482_v32, %v482_v32 }
 0xad8   :  { %v487_v35 = vpack.c.bf16 %v486_v34, %v486_v34 }
 0xada   :  { %496 = vmatmul.bf16.vlgmr.msra.gmra.mxu2 %v487_v35 }
 0xadd   :  { %v484_v36 = vpop.f32.mrf.mxu0 }
 0xb5d   :  { %v497_v37 = vpop.f32.mrf.mxu2 }
 0xb5e   :  { %v498_v38 = vadd.f32 1e-07, %v497_v37 }
 0xb60   :  { %634 = vrsqrt.f32 %v498_v38  ;;  %vm507_vm14 = vweird.f32 %v498_v38 }
 0xb65   :  { %v499_v39 = vpop.f32.mrf.mxu2 }
 0xb66   :  { %v635_v40 = vpop.eup %634 }
 0xb67   :  { %v502_v41 = vmul.f32 %v635_v40, %v498_v38  ;;  %vm508_vm13 = vweird.f32 %v635_v40 }
 0xb68   :  { %vm509_vm15 = vmor %vm507_vm14, %vm508_vm13 }
 0xb69   :  { %v503_v42 = vmul.f32 %v635_v40, %v502_v41 }
 0xb6b   :  { %v504_v8 = vmul.f32 0.5, %v503_v42 }
 0xb6d   :  { %v505_v43 = vsub.f32 1.5, %v504_v8 }
 0xb6f   :  { %v506_v10 = vmul.f32 %v635_v40, %v505_v43 }
 0xb71   :  { %v510_v12 = vsel %vm509_vm15, %v635_v40, %v506_v10 }
 0xb72   :  { %v511_v44 = vmul.f32 %v510_v12, %v482_v32 }
 0xb74   :  { %512 = vst [vmem:[#allocation8] sm:$0x3] %v511_v44 }
 0xb75   :  { %523 = dma.vmem_to_hbm [thread:$0]  %s519_s7, 32, %s521_s10, [#allocation5]  }
 0xb76   :  { %712 = dma.done.wait [#allocation5], 32  }
 0xb77   :  { %713 = vsyncadd [#allocation5], 4294967264 }
 0xb78   :  { %528 = vsyncpa [#allocation4], 1 }
 0xb79   :  { %529 = vsyncpa [#allocation7], 1 }
 0xb7a   :  { %530 = vsyncpa [#allocation5], 1 }

</bundles_post_ra>
